<compile_context>
chip_gen: v7x
topology: tpu7x:2x2x1
jax: 0.10.0
libtpu: 0.0.40
codegen_flags: <defaults>
</compile_context>

<pallas_src>
import functools
import math

import jax
import jax.numpy as jnp
from jax.experimental import pallas as pl
from jax.experimental.pallas import tpu as pltpu


# --- erf-based GELU from elementary ops (A&S 7.1.26, |error| <= ~1.5e-7) ------------------
_ERF_P = 0.3275911
_ERF_A1 = 0.254829592
_ERF_A2 = -0.284496736
_ERF_A3 = 1.421413741
_ERF_A4 = -1.453152027
_ERF_A5 = 1.061405429
_INV_SQRT2 = 1.0 / math.sqrt(2.0)


def _erf_approx_f32(x):
    z = jnp.abs(x)
    # Divide goes to the EUP (approx reciprocal) -> does not compete for VALU slots.
    t = pl.reciprocal(1.0 + _ERF_P * z, approx=True)
    poly = t * (_ERF_A1 + t * (_ERF_A2 + t * (_ERF_A3 + t * (_ERF_A4 + t * _ERF_A5))))
    y = 1.0 - poly * jnp.exp(-z * z)
    return jnp.where(x >= 0.0, y, -y)


def _gelu_erf(x):
    return 0.5 * x * (1.0 + _erf_approx_f32(x * _INV_SQRT2))


# --- kernel -------------------------------------------------------------------------------
def _intermediate_kernel(act, x_ref, w_ref, b_ref, o_ref):
    # x_ref: (tm, H) bf16   w_ref: (I, H) bf16 (PyTorch layout, contracted on last dim)
    # Single-step K: MXU matmul with f32 accumulation, bias + activation fused, one store.
    acc = jax.lax.dot_general(
        x_ref[...], w_ref[...],
        dimension_numbers=(((1,), (1,)), ((), ())),
        preferred_element_type=jnp.float32)          # (tm, I) f32
    y = acc + b_ref[...].astype(jnp.float32)
    if act == "gelu":
        y = _gelu_erf(y)
    elif act == "relu":
        y = jnp.maximum(y, 0.0)
    elif act == "swish":
        y = y * jax.nn.sigmoid(y)
    else:
        raise ValueError(f"unsupported activation: {act}")
    o_ref[...] = y.astype(o_ref.dtype)


def _round_up(x, m):
    return ((x + m - 1) // m) * m


# --- wrapper ------------------------------------------------------------------------------
def bert_intermediate(hidden_states, weight, bias, act="gelu", tm=256):
    """hidden_states: (..., H); weight: (I, H) PyTorch Linear layout; bias: (I,)."""
    *lead, H = hidden_states.shape
    I = weight.shape[0]

    x2d = hidden_states.reshape(-1, H)
    M = x2d.shape[0]
    out_dtype = hidden_states.dtype

    # bf16 MXU operands (accumulation forced to f32 inside the kernel).
    x2d = x2d.astype(jnp.bfloat16)
    w = weight.astype(jnp.bfloat16)           # keep (I, H): no HBM transpose per call
    b = bias.reshape(1, I).astype(jnp.float32)

    # M tiling: never collapse to a single giant block — pad M up to a multiple of tm.
    tm = max(8, min(tm, _round_up(M, 8)))
    Mp = _round_up(M, tm)
    if Mp != M:
        x2d = jnp.pad(x2d, ((0, Mp - M), (0, 0)))
    grid = (Mp // tm,)

    out = pl.pallas_call(
        functools.partial(_intermediate_kernel, act),
        out_shape=jax.ShapeDtypeStruct((Mp, I), out_dtype),
        grid_spec=pltpu.PrefetchScalarGridSpec(
            num_scalar_prefetch=0,
            grid=grid,
            in_specs=[
                pl.BlockSpec((tm, H), lambda i: (i, 0)),   # x: streamed over M
                pl.BlockSpec((I, H), lambda i: (0, 0)),    # W: fully resident, DMA'd once
                pl.BlockSpec((1, I), lambda i: (0, 0)),    # bias: resident
            ],
            out_specs=pl.BlockSpec((tm, I), lambda i: (i, 0)),
        ),
        compiler_params=pltpu.CompilerParams(
            dimension_semantics=("parallel",),             # M tiles shard across TCs
            vmem_limit_bytes=48 * 1024 * 1024,             # headroom on v7x (64 MiB/TC)
        ),
    )(x2d, w, b)

    if Mp != M:
        out = out[:M]
    return out.reshape(*lead, I)


# --- pure-JAX reference (exact erf GELU on the same bf16-cast operands) -------------------
def _reference(hidden_states, weight, bias):
    xb = hidden_states.astype(jnp.bfloat16).astype(jnp.float32)
    wb = weight.astype(jnp.bfloat16).astype(jnp.float32)
    y = xb @ wb.T + bias
    return y * 0.5 * (1.0 + jax.scipy.special.erf(y / math.sqrt(2.0)))


if __name__ == "__main__":
    # Small config: batch=2, seq=8, hidden=32, intermediate=128 (4x hidden, BERT-style).
    B, S, H, I = 2, 8, 32, 128

    key = jax.random.PRNGKey(0)
    kx, kw, kb = jax.random.split(key, 3)
    x = jax.random.normal(kx, (B, S, H), jnp.float32)
    weight = 0.05 * jax.random.normal(kw, (I, H), jnp.float32)   # PyTorch (out, in) layout
    bias = 0.05 * jax.random.normal(kb, (I,), jnp.float32)

    # tm=8 -> grid of 2 M-tiles even at this toy size (exercises pipeline / 2-TC sharding).
    out = bert_intermediate(x, weight, bias, act="gelu", tm=8)
    out = jax.block_until_ready(out)

    ref = _reference(x, weight, bias)
    assert out.shape == (B, S, I)
    # Tolerance covers the erf polynomial (~1.5e-7) + EUP approx reciprocal; matmul
    # operands are bf16 in both kernel and reference, accumulation is f32 in both.
    assert jnp.max(jnp.abs(out - ref)) < 2e-3, "mismatch vs pure-JAX reference"

    print("KERNEL_OK")
</pallas_src>

<mosaic_0001>
module attributes {stable_mosaic.version = 11 : i64} {
  func.func @_intermediate_kernel(%arg0: i32, %arg1: memref<8x32xbf16, #tpu.memory_space<vmem>>, %arg2: memref<128x32xbf16, #tpu.memory_space<vmem>>, %arg3: memref<1x128xf32, #tpu.memory_space<vmem>>, %arg4: memref<8x128xf32, #tpu.memory_space<vmem>>) attributes {dimension_semantics = [#tpu.dimension_semantics<parallel>], iteration_bounds = array<i64: 2>, scalar_prefetch = 0 : i64, scratch_operands = 0 : i64, tpu.core_type = #tpu.core_type<tc>, window_params = [{transform_indices = @transform_0, window_bounds = array<i64: 8, 32>}, {pipeline_mode = #tpu.pipeline_mode<synchronous>, transform_indices = @transform_1, window_bounds = array<i64: 128, 32>}, {pipeline_mode = #tpu.pipeline_mode<synchronous>, transform_indices = @transform_2, window_bounds = array<i64: 1, 128>}, {transform_indices = @transform_3, window_bounds = array<i64: 8, 128>}]} {
    %c0 = arith.constant 0 : index
    %c0_0 = arith.constant 0 : index
    %0 = vector.load %arg1[%c0, %c0_0] : memref<8x32xbf16, #tpu.memory_space<vmem>>, vector<8x32xbf16>
    %c0_1 = arith.constant 0 : index
    %c0_2 = arith.constant 0 : index
    %1 = vector.load %arg2[%c0_1, %c0_2] : memref<128x32xbf16, #tpu.memory_space<vmem>>, vector<128x32xbf16>
    %cst = arith.constant dense<0.000000e+00> : vector<8x128xf32>
    %2 = tpu.matmul %0, %1, %cst {dimension_numbers = #tpu.dot_dimension_numbers<[1], [1], [0], [0], [0, 0, 1, 0], [], []>} : vector<8x32xbf16>, vector<128x32xbf16>, vector<8x128xf32> -> vector<8x128xf32>
    %c0_3 = arith.constant 0 : index
    %c0_4 = arith.constant 0 : index
    %3 = vector.load %arg3[%c0_3, %c0_4] : memref<1x128xf32, #tpu.memory_space<vmem>>, vector<1x128xf32>
    %4 = vector.broadcast %3 : vector<1x128xf32> to vector<8x128xf32>
    %5 = arith.addf %2, %4 : vector<8x128xf32>
    %cst_5 = arith.constant 5.000000e-01 : f32
    %6 = vector.broadcast %cst_5 : f32 to vector<8x128xf32>
    %7 = arith.mulf %6, %5 : vector<8x128xf32>
    %cst_6 = arith.constant 0.707106769 : f32
    %8 = vector.broadcast %cst_6 : f32 to vector<8x128xf32>
    %9 = arith.mulf %5, %8 : vector<8x128xf32>
    %10 = math.absf %9 : vector<8x128xf32>
    %cst_7 = arith.constant 0.327591091 : f32
    %11 = vector.broadcast %cst_7 : f32 to vector<8x128xf32>
    %12 = arith.mulf %11, %10 : vector<8x128xf32>
    %cst_8 = arith.constant 1.000000e+00 : f32
    %13 = vector.broadcast %cst_8 : f32 to vector<8x128xf32>
    %14 = arith.addf %13, %12 : vector<8x128xf32>
    %15 = tpu.reciprocal %14 {approx = true} : vector<8x128xf32> -> vector<8x128xf32>
    %cst_9 = arith.constant 1.06140542 : f32
    %16 = vector.broadcast %cst_9 : f32 to vector<8x128xf32>
    %17 = arith.mulf %15, %16 : vector<8x128xf32>
    %cst_10 = arith.constant -1.45315206 : f32
    %18 = vector.broadcast %cst_10 : f32 to vector<8x128xf32>
    %19 = arith.addf %18, %17 : vector<8x128xf32>
    %20 = arith.mulf %15, %19 : vector<8x128xf32>
    %cst_11 = arith.constant 1.42141378 : f32
    %21 = vector.broadcast %cst_11 : f32 to vector<8x128xf32>
    %22 = arith.addf %21, %20 : vector<8x128xf32>
    %23 = arith.mulf %15, %22 : vector<8x128xf32>
    %cst_12 = arith.constant -0.284496725 : f32
    %24 = vector.broadcast %cst_12 : f32 to vector<8x128xf32>
    %25 = arith.addf %24, %23 : vector<8x128xf32>
    %26 = arith.mulf %15, %25 : vector<8x128xf32>
    %cst_13 = arith.constant 0.254829586 : f32
    %27 = vector.broadcast %cst_13 : f32 to vector<8x128xf32>
    %28 = arith.addf %27, %26 : vector<8x128xf32>
    %29 = arith.mulf %15, %28 : vector<8x128xf32>
    %cst_14 = arith.constant 0.000000e+00 : f32
    %30 = vector.broadcast %cst_14 : f32 to vector<8x128xf32>
    %31 = arith.subf %30, %10 : vector<8x128xf32>
    %32 = arith.mulf %31, %10 : vector<8x128xf32>
    %33 = math.exp %32 : vector<8x128xf32>
    %34 = arith.mulf %29, %33 : vector<8x128xf32>
    %cst_15 = arith.constant 1.000000e+00 : f32
    %35 = vector.broadcast %cst_15 : f32 to vector<8x128xf32>
    %36 = arith.subf %35, %34 : vector<8x128xf32>
    %cst_16 = arith.constant 0.000000e+00 : f32
    %37 = vector.broadcast %cst_16 : f32 to vector<8x128xf32>
    %38 = arith.cmpf oge, %9, %37 : vector<8x128xf32>
    %cst_17 = arith.constant 0.000000e+00 : f32
    %39 = vector.broadcast %cst_17 : f32 to vector<8x128xf32>
    %40 = arith.subf %39, %36 : vector<8x128xf32>
    %41 = arith.select %38, %36, %40 : vector<8x128xi1>, vector<8x128xf32>
    %cst_18 = arith.constant 1.000000e+00 : f32
    %42 = vector.broadcast %cst_18 : f32 to vector<8x128xf32>
    %43 = arith.addf %42, %41 : vector<8x128xf32>
    %44 = arith.mulf %7, %43 : vector<8x128xf32>
    %c0_19 = arith.constant 0 : index
    %c0_20 = arith.constant 0 : index
    %45 = vector.load %arg4[%c0_19, %c0_20] : memref<8x128xf32, #tpu.memory_space<vmem>>, vector<8x128xf32>
    tpu.vector_store %arg4[%c0_19, %c0_20], %44 {strides = array<i32>} : memref<8x128xf32, #tpu.memory_space<vmem>>, vector<8x128xf32>,
    return
  }
  func.func @transform_0(%arg0: i32) -> (i32, i32) {
    %c0_i32 = arith.constant 0 : i32
    %c0_i32_0 = arith.constant 0 : i32
    return %arg0, %c0_i32 : i32, i32
  }
  func.func @transform_1(%arg0: i32) -> (i32, i32) {
    %c0_i32 = arith.constant 0 : i32
    %c0_i32_0 = arith.constant 0 : i32
    %c0_i32_1 = arith.constant 0 : i32
    return %c0_i32, %c0_i32_0 : i32, i32
  }
  func.func @transform_2(%arg0: i32) -> (i32, i32) {
    %c0_i32 = arith.constant 0 : i32
    %c0_i32_0 = arith.constant 0 : i32
    %c0_i32_1 = arith.constant 0 : i32
    return %c0_i32, %c0_i32_0 : i32, i32
  }
  func.func @transform_3(%arg0: i32) -> (i32, i32) {
    %c0_i32 = arith.constant 0 : i32
    %c0_i32_0 = arith.constant 0 : i32
    return %arg0, %c0_i32 : i32, i32
  }
}

</mosaic_0001>

<bundles_post_ra>
// kernel: tpu_custom_call.1
= control target key start
LH: loop header
LB: loop body
LE: loop exit
PB: predicated region body
PF: predicated region fallthrough
CT: control target
= control target key end

     0   :  { %8 = vsyncpa [#allocation3], 0  ;;  %s724_s0 = inlined_call_operand.vmem [shape: bf16[16,32], index: 0, kind: input, shape index: {}]   ;;  %s725_s1 = inlined_call_operand.vmem [shape: bf16[128,32], index: 1, kind: input, shape index: {}]   ;;  %s726_s2 = inlined_call_operand.vmem [shape: f32[1,128], index: 2, kind: input, shape index: {}]   ;;  %s727_s3 = inlined_call_operand.hbm [shape: f32[16,128], index: 3, kind: output, shape index: {}]  }
   0x1   :  { %10 = vsyncpa [#allocation3 + $0x1], 0  ;;  %s588_s12 = smov 0   ;;  %s590_s13 = smov 0  }
   0x2   :  { %s592_s14 = smov 0   ;;  %s594_s15 = smov 0  }
   0x3 LB: > { %s609_s16 = sadd.s32 4294967295, %s563_s15   ;;  %s399_s17 = sadd.s32 4294967294, %s563_s15   ;;  %s563_s15 = sphi %s594_s15, %s733_s15   ;;  %s559_s14 = sphi %s592_s14, %s732_s14   ;;  %s555_s13 = sphi %s590_s13, %s731_s13   ;;  %s551_s12 = sphi %s588_s12, %s730_s12  }
   0x4   : > { %s613_s18 = sadd.s32 1, %s563_s15   ;;  %s91_s19 = sadd.s32 1, %s559_s14 }
   0x5   : > { %s88_s20 = ssub.s32 %s563_s15, %s613_s18  ;;  %p101_p0 = scmp.ne.s32.totalorder %s559_s14, %s555_s13 }
   0x6   : > { %p89_p1 = scmp.eq.s32.totalorder %s88_s20, 0  ;;  %p102_p2 = scmp.eq.s32.totalorder %s609_s16, 1 }
   0x7   : > { %p107_p3 = scmp.ne.s32.totalorder %s555_s13, %s551_s12  ;;  %p108_p4 = scmp.eq.s32.totalorder %s399_s17, 1 }
   0x8   : > { %s624_s21 = scalar_select %p89_p1, %s559_s14, %s91_s19  }
   0x9   : > { %p626_p5 = por %p102_p2, %p101_p0  ;;  %p630_p6 = por %p108_p4, %p107_p3 }
   0xa   : > { %p402_p7 = scmp.ge.s32.totalorder %s563_s15, 1  ;;  %p139_p8 = scmp.lt.s32.totalorder %s563_s15, 3 }
   0xc   : > { %p140_p9 = pnand %p402_p7, %p139_p8 }
   0xd   : > { %v489_v0 = vld [vmem:[%s725_s1] sm:$0xff] (!%p140_p9)   ;;  %v565_v1 = vmov (!%p140_p9), 0.0   ;;  %vm231_vm0 = vcmask (!%p140_p9), 261120   ;;  %v490_v3 = vld [vmem:[%s725_s1 + $0x8] sm:$0xff] (!%p140_p9)   ;;  %vm566_vm1 = vmmov (!%p140_p9), 0   ;;  %v491_v5 = vld [vmem:[%s725_s1 + $0x10] sm:$0xff] (!%p140_p9)  }
   0xe   : > { %143 = sbr.rel (%p140_p9) target bundleno = 354 (0x162), region = 32  ;;  %428 = vmatprep.subr.bf16.mxu0 (!%p140_p9), %v565_v1  ;;  %v236_v2 = vsel (!%p140_p9), %vm231_vm0, %v489_v0, 0  ;;  %v239_v4 = vsel (!%p140_p9), %vm231_vm0, %v490_v3, 0  ;;  %444 = vmatprep.mubr.msk.bf16.mxu0 (!%p140_p9), %vm566_vm1, %v565_v1  ;;  %v242_v6 = vsel (!%p140_p9), %vm231_vm0, %v491_v5, 0  ;;  %v492_v7 = vld [vmem:[%s725_s1 + $0x18] sm:$0xff] (!%p140_p9)   ;;  %v493_v9 = vld [vmem:[%s725_s1 + $0x20] sm:$0xff] (!%p140_p9)  }
   0xf   : > { %429 = vmatpush3.bf16.xpose.msra.mxu0 (!%p140_p9), %v236_v2  ;;  %v245_v8 = vsel (!%p140_p9), %vm231_vm0, %v492_v7, 0  ;;  %v248_v10 = vsel (!%p140_p9), %vm231_vm0, %v493_v9, 0  ;;  %v494_v11 = vld [vmem:[%s725_s1 + $0x28] sm:$0xff] (!%p140_p9)   ;;  %v495_v13 = vld [vmem:[%s725_s1 + $0x30] sm:$0xff] (!%p140_p9)   ;;  %p162_p10 = scmp.lt.s32.totalorder (!%p140_p9), %s609_s16, 1  ;;  %v496_v15 = vld [vmem:[%s725_s1 + $0x38] sm:$0xff] (!%p140_p9)  }
  0x10   : > { %430 = vmatprep.subr.bf16.mxu0 (!%p140_p9), %v565_v1  ;;  %v251_v12 = vsel (!%p140_p9), %vm231_vm0, %v494_v11, 0  ;;  %v254_v14 = vsel (!%p140_p9), %vm231_vm0, %v495_v13, 0  ;;  %v257_v16 = vsel (!%p140_p9), %vm231_vm0, %v496_v15, 0  ;;  %v405_v18 = vld [vmem:[%s726_s2] ss:$0 sm:$0xff] (!%p140_p9)  ;;  %s159_s29 = sand.u32 (!%p140_p9), 1, %s555_s13  }
  0x11   : > { %s403_s30 = sshll.u32 (!%p140_p9), %s159_s29, 3  ;;  %s416_s4 = sshll.u32 (!%p140_p9), %s609_s16, 7 }
  0x12   : > { %s161_s5 = scalar_lea.vmem (!%p140_p9), [#allocation2], %s403_s30  ;;  %s682_s9 = scalar_lea.hbm (!%p140_p9), %s727_s3, %s416_s4 }
  0x13   : > { %s340_s6 = sshll.u32 (!%p140_p9), %s161_s5, 4  ;;  %s327_s10 = scalar_lea.sflag (!%p140_p9), [#allocation3], %s159_s29  ;;  %s684_s6 = int_to_ptr.vmem [resolvable:$true] %s340_s6 }
  0x14   : > { %s501_s11 = scalar_lea.vmem (!%p140_p9), %s684_s6, 128 }
  0x15   : > { %s163_s19 = scalar_select %p162_p10, %s609_s16, 1 }
  0x16   : > { %p502_p11 = scmp.ne.s32.totalorder %s684_s6, %s501_s11  ;;  %s567_s16 = smov [#allocation2]  }
  0x17   : > { %431 = vmatpush3.bf16.xpose.msra.mxu0 %v239_v4  ;;  %s404_s20 = sshll.u32 %s163_s19, 2  ;;  %s505_s17 = sshll.u32 %s567_s16, 4  ;;  %s506_s17 = int_to_ptr.vmem [resolvable:$false] %s505_s17 }
  0x18   : > { %432 = vmatprep.subr.bf16.mxu0 %v565_v1  ;;  %s165_s26 = scalar_lea.vmem %s724_s0, %s404_s20  ;;  %p503_p12 = pnand %p502_p11, %p626_p5 }
  0x19   : > { %v167_v17 = vld [vmem:[%s165_s26] sm:$0xf]  ;;  %s507_s19 = scalar_lea.vmem %s506_s17, 256  ;;  %p508_p0 = scmp.lt.s32.totalorder %s684_s6, %s506_s17 }
  0x1a   : > { %p504_p13 = pneg %p503_p12  ;;  %p509_p1 = scmp.lt.s32.totalorder %s507_s19, %s501_s11 }
  0x1c   : > { %p510_p2 = por %p509_p1, %p508_p0 }
  0x1e   : > { %p511_p3 = pnand %p510_p2, %p504_p13 }
  0x1f   : > { %433 = vmatpush3.bf16.xpose.msra.mxu0 %v242_v6 }
  0x20   : > { %434 = vmatprep.subr.bf16.mxu0 %v565_v1 }
  0x27   : > { %435 = vmatpush3.bf16.xpose.msra.mxu0 %v245_v8 }
  0x28   : > { %436 = vmatprep.subr.bf16.mxu0 %v565_v1 }
  0x2f   : > { %437 = vmatpush3.bf16.xpose.msra.mxu0 %v248_v10 }
  0x30   : > { %438 = vmatprep.subr.bf16.mxu0 %v565_v1 }
  0x37   : > { %439 = vmatpush3.bf16.xpose.msra.mxu0 %v251_v12 }
  0x38   : > { %440 = vmatprep.subr.bf16.mxu0 %v565_v1 }
  0x3f   : > { %441 = vmatpush3.bf16.xpose.msra.mxu0 %v254_v14 }
  0x40   : > { %442 = vmatprep.subr.bf16.mxu0 %v565_v1 }
  0x47   : > { %443 = vmatpush3.bf16.xpose.msra.mxu0 %v257_v16 }
  0x4e   : > { %445 = vmatmul.mubr.msk.bf16.vlgmr.msra.gmra.mrb[0].mxu0 %vm231_vm0, %v167_v17 }
 0x121   : > { %v293_v19 = vpop.f32.mrb[0].mxu0 }
 0x122   : > { %v294_v20 = vadd.f32 %v405_v18, %v293_v19  ;;  %v446_v21 = vpop.f32.mrb[1].mxu0 }
 0x123   : > { %v296_v22 = vpop.f32.mrb[2].mxu0 }
 0x124   : > { %v300_v23 = vmul.f32 0.70710677, %v294_v20  ;;  %v447_v24 = vpop.f32.mrb[3].mxu0  ;;  %v299_v46 = vmul.f32 0.5, %v294_v20 }
 0x126   : > { %v301_v25 = vand.u32 2147483647, %v300_v23  ;;  %vm320_vm2 = vcmp.ge.f32.partialorder %v300_v23, 0.0 }
 0x128   : > { %v302_v26 = vmul.f32 0.3275911, %v301_v25  ;;  %v314_v28 = vsub.f32 0.0, %v301_v25 }
 0x12a   : > { %v303_v27 = vadd.f32 1.0, %v302_v26  ;;  %v315_v30 = vmul.f32 %v314_v28, %v301_v25 }
 0x12c   : > { %497 = vrcp.f32 %v303_v27  ;;  %v316_v33 = vmul.f32 1.442695, %v315_v30 }
 0x12e   : > { %499 = vpow2.f32 %v316_v33 }
 0x136   : > { %v498_v29 = vpop.eup %497 }
 0x137   : > { %v305_v31 = vmul.f32 1.0614054, %v498_v29 }
 0x138   : > { %v500_v41 = vpop.eup %499 }
 0x139   : > { %v306_v32 = vadd.f32 -1.4531521, %v305_v31 }
 0x13b   : > { %v307_v34 = vmul.f32 %v498_v29, %v306_v32 }
 0x13d   : > { %v308_v35 = vadd.f32 1.4214138, %v307_v34 }
 0x13f   : > { %v309_v36 = vmul.f32 %v498_v29, %v308_v35 }
 0x141   : > { %v310_v37 = vadd.f32 -0.28449672, %v309_v36 }
 0x143   : > { %v311_v38 = vmul.f32 %v498_v29, %v310_v37 }
 0x145   : > { %v312_v39 = vadd.f32 0.2548296, %v311_v38 }
 0x147   : > { %v313_v40 = vmul.f32 %v498_v29, %v312_v39 }
 0x149   : > { %v318_v42 = vmul.f32 %v500_v41, %v313_v40 }
 0x14b   : > { %v319_v43 = vsub.f32 1.0, %v318_v42 }
 0x14d   : > { %v321_v44 = vsub.f32 0.0, %v319_v43 }
 0x14f   : > { %v322_v45 = vsel %vm320_vm2, %v319_v43, %v321_v44 }
 0x150   : > { %v323_v47 = vadd.f32 1.0, %v322_v45 }
 0x152   : > { %v324_v48 = vmul.f32 %v323_v47, %v299_v46 }
 0x154   : > { %325 = vst [vmem:[%s161_s5] sm:$0xff] %v324_v48 }
 0x155   : > { %514 = shalt.err (!%p511_p3)
}
 0x156   : > { %s515_s20 = scalar_lea.hbm %s682_s9, 128  ;;  %s519_s26 = scalar_lea.hbm %s727_s3, 256 }
 0x157   : > { %p516_p4 = scmp.ne.s32.totalorder %s682_s9, %s515_s20  ;;  %p520_p9 = scmp.lt.u32.totalorder %s682_s9, %s727_s3 }
 0x158   : > { %p521_p10 = scmp.lt.u32.totalorder %s519_s26, %s515_s20  ;;  %p523_p12 = scmp.lt.u32.totalorder %s515_s20, %s682_s9 }
 0x159   : > { %p517_p7 = pnand %p516_p4, %p626_p5 }
 0x15a   : > { %p522_p11 = por %p521_p10, %p520_p9 }
 0x15b   : > { %p518_p8 = pneg %p517_p7 }
 0x15c   : > { %p524_p13 = por %p523_p12, %p522_p11 }
 0x15e   : > { %p525_p0 = pnand %p524_p13, %p518_p8 }
 0x160   : > { %528 = shalt.err (!%p525_p0)
}
 0x161   : > { %448 = dma.vmem_to_hbm [thread:$0]  (%p626_p5), %s684_s6, 128, %s682_s9, %s327_s10  }
 0x162 PF: > { %p454_p1 = scmp.ge.s32.totalorder %s563_s15, 2  ;;  %s352_s29 = sand.u32 1, %s551_s12  }
 0x163   : > { %s353_s30 = scalar_lea.sflag [#allocation3], %s352_s29 }
 0x164   : > { %p451_p2 = pnand %p454_p1, %p630_p6 }
 0x166   : > { %546 = dma.done.wait (!%p451_p2), %s353_s30, 128  }
 0x167   : > { %548 = vsyncadd (!%p451_p2), %s353_s30, 4294967168  ;;  %p13_p3 = scmp.ge.s32.totalorder %s613_s18, 4   ;;  %s730_s12 = smov %s555_s13 }
 0x168   : > { %s731_s13 = smov %s559_s14  ;;  %s732_s14 = smov %s624_s21 }
 0x169   : > { %s733_s15 = smov %s613_s18  ;;  %15 = sbr.rel (!%p13_p3) target bundleno = 3 (0x3), region = 67 }
 0x170   :  { %358 = vsyncpa [#allocation3], 1 }
 0x171   :  { %360 = vsyncpa [#allocation3 + $0x1], 1 }

</bundles_post_ra>
